<compile_context>
chip_gen: v7x
topology: tpu7x:2x2x1
jax: 0.10.0
libtpu: 0.0.40
codegen_flags: <defaults>
</compile_context>

<pallas_src>
import functools
import math

import jax
import jax.numpy as jnp
from jax.experimental import pallas as pl
from jax.experimental.pallas import tpu as pltpu


_MASK_NEG = -9e15          # matches the PyTorch reference's zero_vec fill


def _round_up(x, m):
    return ((x + m - 1) // m) * m


def _elementwise_dtype():
    """bf16 elementwise pipeline on v6e/v7x (bf16 VPU/EUP); f32 on v5e/older."""
    try:
        dk = jax.devices()[0].device_kind.lower()
    except Exception:
        return jnp.float32
    if any(t in dk for t in ("v2", "v3", "v4", "v5")):
        return jnp.float32
    return jnp.bfloat16


# --------------------------------------------------------------------------- #
# Stage 1: fused projection  x @ W_aug -> H (bf16), f1 (f32), f2 (f32)
# --------------------------------------------------------------------------- #
def gat_projection_kernel(x_ref, w_ref, h_ref, f1_ref, f2_ref, *, hf, nheads):
    xw = jnp.dot(x_ref[...].astype(jnp.bfloat16), w_ref[...],
                 preferred_element_type=jnp.float32)   # (rows, hf + 2*nheads)
    h_ref[...] = xw[:, :hf].astype(h_ref.dtype)        # per-head features
    f1_ref[...] = xw[:, hf:hf + nheads]                # h @ a1  per head
    f2_ref[...] = xw[:, hf + nheads:]                  # h @ a2  per head


# --------------------------------------------------------------------------- #
# Stage 2: tiled attention with online softmax over neighbor blocks
# --------------------------------------------------------------------------- #
def gat_attention_kernel(f1_ref, f2_ref, adj_ref, h_ref, out_ref,
                         m_sc, l_sc, acc_sc,
                         *, nheads, f_out, alpha, final, elem_dtype):
    j = pl.program_id(1)

    @pl.when(j == 0)
    def _init():
        m_sc[...] = jnp.full_like(m_sc, -jnp.inf)
        l_sc[...] = jnp.zeros_like(l_sc)
        acc_sc[...] = jnp.zeros_like(acc_sc)

    ed = elem_dtype
    slope = jnp.asarray(alpha, ed)
    zero = jnp.zeros((), ed)
    neg = jnp.full((), _MASK_NEG, ed)

    # Per-(i, j)-tile quantities shared by every head (hoisted out of the loop).
    bias = jnp.where(adj_ref[...] > 0, zero, neg)      # additive mask (TI, TJ)
    f1 = f1_ref[...].astype(ed)                        # (TI, nheads)
    f2 = f2_ref[...].astype(ed)                        # (nheads, TJ)
    h = h_ref[...]                                     # (TJ, nheads*f_out) bf16

    m_prev = m_sc[...]                                 # (TI, nheads) f32
    l_prev = l_sc[...]                                 # (TI, nheads) f32
    acc_prev = acc_sc[...]                             # (TI, nheads*f_out) f32

    m_cols, l_cols, acc_cols = [], [], []
    for hd in range(nheads):                           # static unroll (small)
        mp = m_prev[:, hd:hd + 1]                      # (TI, 1) f32
        s = f1[:, hd:hd + 1] + f2[hd:hd + 1, :]        # (TI, TJ) elem dtype
        e = jnp.maximum(s, slope * s) + bias           # LeakyReLU + adj mask
        mn = jnp.maximum(
            mp, jnp.max(e, axis=1, keepdims=True).astype(jnp.float32))
        scale = jnp.exp(mp - mn)                       # (TI, 1) f32
        p = jnp.exp(e - mn.astype(ed))                 # unnormalized probs
        psum = jnp.sum(p.astype(jnp.float32), axis=1, keepdims=True)
        part = jnp.dot(p.astype(jnp.bfloat16),
                       h[:, hd * f_out:(hd + 1) * f_out],
                       preferred_element_type=jnp.float32)   # (TI, f_out)
        m_cols.append(mn)
        l_cols.append(scale * l_prev[:, hd:hd + 1] + psum)
        acc_cols.append(scale * acc_prev[:, hd * f_out:(hd + 1) * f_out] + part)

    # Slab-level scratch writes (lane-contiguous; no per-head padded stores).
    m_sc[...] = m_cols[0] if nheads == 1 else jnp.concatenate(m_cols, axis=1)
    l_sc[...] = l_cols[0] if nheads == 1 else jnp.concatenate(l_cols, axis=1)
    acc_sc[...] = (acc_cols[0] if nheads == 1
                   else jnp.concatenate(acc_cols, axis=1))

    @pl.when(j == pl.num_programs(1) - 1)
    def _finalize():
        # Deferred softmax normalization: one approx reciprocal (EUP slot).
        inv_l = pl.reciprocal(l_sc[...], approx=True)  # (TI, nheads)
        acc = acc_sc[...]
        cols = [acc[:, hd * f_out:(hd + 1) * f_out] * inv_l[:, hd:hd + 1]
                for hd in range(nheads)]
        hp = cols[0] if nheads == 1 else jnp.concatenate(cols, axis=1)
        if final:
            # gat.forward: ELU then ReLU == ReLU, then log_softmax over classes
            # (the output layer has a single head, so axis=1 is the class dim).
            out = jnp.maximum(hp, 0.0)
            mm = jnp.max(out, axis=1, keepdims=True)
            lse = jnp.log(jnp.sum(jnp.exp(out - mm), axis=1, keepdims=True)) + mm
            out = out - lse
        else:
            # ELU; exp only on the clamped-negative branch (no inf on pos side)
            out = jnp.where(hp > 0, hp, jnp.exp(jnp.minimum(hp, 0.0)) - 1.0)
        out_ref[...] = out.astype(out_ref.dtype)       # one lane-dense store


# --------------------------------------------------------------------------- #
# Layer wrapper: all heads of one GraphAttentionLayer group, two pallas_calls
# --------------------------------------------------------------------------- #
def gat_layer(x, w_list, a_list, adj_i8, *, alpha, final, tile_i, tile_j,
              elem_dtype):
    n, f_in = x.shape            # n already padded to a multiple of the tiles
    nheads = len(w_list)
    f_out = w_list[0].shape[1]
    hf = nheads * f_out
    assert 0.0 < alpha < 1.0     # max(x, a*x) == LeakyReLU(a) requires this
    assert n % tile_i == 0 and n % tile_j == 0

    # Fused/augmented projection weights (tiny, plain-JAX glue).
    w_all = jnp.concatenate([w.astype(jnp.float32) for w in w_list], axis=1)
    wa1 = jnp.concatenate(
        [w_list[h].astype(jnp.float32) @ a_list[h][:f_out].astype(jnp.float32)
         for h in range(nheads)], axis=1)                   # (f_in, nheads)
    wa2 = jnp.concatenate(
        [w_list[h].astype(jnp.float32) @ a_list[h][f_out:].astype(jnp.float32)
         for h in range(nheads)], axis=1)                   # (f_in, nheads)
    w_aug = jnp.concatenate([w_all, wa1, wa2], axis=1).astype(jnp.bfloat16)
    p_cols = hf + 2 * nheads

    # ---- Stage 1: one wide bf16 projection matmul, huge row tile -----------
    rows1 = n if n * (f_in + p_cols) * 4 <= (8 << 20) else tile_i
    h_bf, f1, f2 = pl.pallas_call(
        functools.partial(gat_projection_kernel, hf=hf, nheads=nheads),
        out_shape=(jax.ShapeDtypeStruct((n, hf), jnp.bfloat16),
                   jax.ShapeDtypeStruct((n, nheads), jnp.float32),
                   jax.ShapeDtypeStruct((n, nheads), jnp.float32)),
        grid=(n // rows1,),
        in_specs=[pl.BlockSpec((rows1, f_in), lambda i: (i, 0)),
                  pl.BlockSpec((f_in, p_cols), lambda i: (0, 0))],
        out_specs=(pl.BlockSpec((rows1, hf), lambda i: (i, 0)),
                   pl.BlockSpec((rows1, nheads), lambda i: (i, 0)),
                   pl.BlockSpec((rows1, nheads), lambda i: (i, 0))),
        compiler_params=pltpu.CompilerParams(
            dimension_semantics=("parallel",)),
    )(x, w_aug)

    # Tiny (n, nheads) f32 transpose left to XLA glue (negligible traffic).
    # TODO(synk): emit f2 pre-transposed from Stage 1 once Mosaic's narrow
    # (n, nheads)->(nheads, n) transpose lowering is verified on all targets.
    f2t = f2.T

    # ---- Stage 2: tiled attention with online softmax ----------------------
    ti, tj = tile_i, tile_j
    steps_i = n // ti
    cost = pl.CostEstimate(
        flops=2 * n * n * hf + 10 * n * n * nheads,
        transcendentals=n * n * nheads,
        bytes_accessed=(n * n                        # adj int8, read once
                        + steps_i * n * hf * 2       # H re-fetched per i block
                        + steps_i * n * nheads * 4   # f2t re-fetched per i block
                        + n * nheads * 4             # f1
                        + n * hf * 4),               # output
    )
    kern = functools.partial(gat_attention_kernel, nheads=nheads, f_out=f_out,
                             alpha=float(alpha), final=final,
                             elem_dtype=elem_dtype)
    return pl.pallas_call(
        kern,
        out_shape=jax.ShapeDtypeStruct((n, hf), jnp.float32),
        grid=(n // ti, n // tj),
        in_specs=[pl.BlockSpec((ti, nheads), lambda i, j: (i, 0)),     # f1 rows
                  pl.BlockSpec((nheads, tj), lambda i, j: (0, j)),     # f2 cols
                  pl.BlockSpec((ti, tj), lambda i, j: (i, j)),         # adj int8
                  pl.BlockSpec((tj, hf), lambda i, j: (j, 0))],        # H j-tile
        out_specs=pl.BlockSpec((ti, hf), lambda i, j: (i, 0)),
        scratch_shapes=[pltpu.VMEM((ti, nheads), jnp.float32),         # m slab
                        pltpu.VMEM((ti, nheads), jnp.float32),         # l slab
                        pltpu.VMEM((ti, hf), jnp.float32)],            # acc slab
        compiler_params=pltpu.CompilerParams(
            dimension_semantics=("parallel", "arbitrary"),
            vmem_limit_bytes=32 * 1024 * 1024),
        cost_estimate=cost,
    )(f1, f2t, adj_i8, h_bf)


def gat_forward(x, adj, head_params, out_params, *, alpha, tile=512):
    """gat.forward in eval mode (dropout = identity)."""
    n = x.shape[0]
    ed = _elementwise_dtype()

    # Tiles are multiples of 128 (fast path), capped at the padded problem
    # size; n is zero-padded up to a tile multiple (padded cols are non-edges,
    # padded rows are sliced off at the end) instead of falling back to n-wide
    # tiles that would blow up VMEM for odd n.
    t = min(tile, _round_up(n, 128))
    n_pad = _round_up(n, t)
    if n_pad != n:
        x = jnp.pad(x, ((0, n_pad - n), (0, 0)))
        adj = jnp.pad(adj, ((0, n_pad - n), (0, n_pad - n)))
    adj_i8 = (adj > 0).astype(jnp.int8)   # adjacency streamed as int8 tiles

    w_heads = [w for (w, _) in head_params]
    a_heads = [a for (_, a) in head_params]
    h = gat_layer(x, w_heads, a_heads, adj_i8, alpha=alpha, final=False,
                  tile_i=t, tile_j=t, elem_dtype=ed)
    w_out, a_out = out_params
    out = gat_layer(h, [w_out], [a_out], adj_i8, alpha=alpha, final=True,
                    tile_i=t, tile_j=t, elem_dtype=ed)
    return out[:n]


def xavier_uniform(key, shape, gain):
    fan_in, fan_out = shape[0], shape[1]
    limit = gain * math.sqrt(6.0 / (fan_in + fan_out))
    return jax.random.uniform(key, shape, jnp.float32, -limit, limit)


if __name__ == "__main__":
    # Small config consistent with the module: N nodes (perfect square, as the
    # original assumes via sqrt(adj.shape[-1])), nfeat -> nheads*nhid -> nclass.
    N, nfeat, nhid, nclass, nheads = 256, 16, 8, 8, 4
    alpha = 0.2          # LeakyReLU slope
    gain = 1.414

    key = jax.random.PRNGKey(0)
    keys = jax.random.split(key, 2 + 2 * nheads + 2)

    x = jax.random.normal(keys[0], (N, nfeat), jnp.float32)
    adj = (jax.random.uniform(keys[1], (N, N)) > 0.9).astype(jnp.float32)
    adj = jnp.maximum(adj, jnp.eye(N, dtype=jnp.float32))   # self-loops

    head_params = []
    for i in range(nheads):
        W = xavier_uniform(keys[2 + 2 * i], (nfeat, nhid), gain)
        a = xavier_uniform(keys[3 + 2 * i], (2 * nhid, 1), gain)
        head_params.append((W, a))

    Wo = xavier_uniform(keys[2 + 2 * nheads], (nhid * nheads, nclass), gain)
    ao = xavier_uniform(keys[3 + 2 * nheads], (2 * nclass, 1), gain)

    out = gat_forward(x, adj, head_params, (Wo, ao), alpha=alpha)
    out = jax.block_until_ready(out)
    assert out.shape == (N, nclass)
    assert bool(jnp.all(jnp.isfinite(out)))
    print("KERNEL_OK")
</pallas_src>

<mosaic_0001>
module attributes {stable_mosaic.version = 11 : i64} {
  func.func @gat_projection_kernel(%arg0: i32, %arg1: memref<256x16xf32, #tpu.memory_space<vmem>>, %arg2: memref<16x40xbf16, #tpu.memory_space<vmem>>, %arg3: memref<256x32xbf16, #tpu.memory_space<vmem>>, %arg4: memref<256x4xf32, #tpu.memory_space<vmem>>, %arg5: memref<256x4xf32, #tpu.memory_space<vmem>>) attributes {dimension_semantics = [#tpu.dimension_semantics<parallel>], iteration_bounds = array<i64: 1>, scalar_prefetch = 0 : i64, scratch_operands = 0 : i64, tpu.core_type = #tpu.core_type<tc>, window_params = [{transform_indices = @transform_0, window_bounds = array<i64: 256, 16>}, {pipeline_mode = #tpu.pipeline_mode<synchronous>, transform_indices = @transform_1, window_bounds = array<i64: 16, 40>}, {transform_indices = @transform_2, window_bounds = array<i64: 256, 32>}, {transform_indices = @transform_3, window_bounds = array<i64: 256, 4>}, {transform_indices = @transform_4, window_bounds = array<i64: 256, 4>}]} {
    %c0 = arith.constant 0 : index
    %c0_0 = arith.constant 0 : index
    %0 = vector.load %arg1[%c0, %c0_0] : memref<256x16xf32, #tpu.memory_space<vmem>>, vector<256x16xf32>
    %1 = arith.truncf %0 : vector<256x16xf32> to vector<256x16xbf16>
    %c0_1 = arith.constant 0 : index
    %c0_2 = arith.constant 0 : index
    %2 = vector.load %arg2[%c0_1, %c0_2] : memref<16x40xbf16, #tpu.memory_space<vmem>>, vector<16x40xbf16>
    %cst = arith.constant dense<0.000000e+00> : vector<256x40xf32>
    %3 = tpu.matmul %1, %2, %cst {dimension_numbers = #tpu.dot_dimension_numbers<[1], [0], [0], [1], [0, 0, 1, 1], [], []>} : vector<256x16xbf16>, vector<16x40xbf16>, vector<256x40xf32> -> vector<256x40xf32>
    %4 = vector.extract_strided_slice %3 {offsets = [0, 0], sizes = [256, 32], strides = [1, 1]} : vector<256x40xf32> to vector<256x32xf32>
    %5 = arith.truncf %4 : vector<256x32xf32> to vector<256x32xbf16>
    %c0_3 = arith.constant 0 : index
    %c0_4 = arith.constant 0 : index
    %6 = vector.load %arg3[%c0_3, %c0_4] : memref<256x32xbf16, #tpu.memory_space<vmem>>, vector<256x32xbf16>
    tpu.vector_store %arg3[%c0_3, %c0_4], %5 {strides = array<i32>} : memref<256x32xbf16, #tpu.memory_space<vmem>>, vector<256x32xbf16>,
    %7 = vector.extract_strided_slice %3 {offsets = [0, 32], sizes = [256, 4], strides = [1, 1]} : vector<256x40xf32> to vector<256x4xf32>
    %c0_5 = arith.constant 0 : index
    %c0_6 = arith.constant 0 : index
    %8 = vector.load %arg4[%c0_5, %c0_6] : memref<256x4xf32, #tpu.memory_space<vmem>>, vector<256x4xf32>
    tpu.vector_store %arg4[%c0_5, %c0_6], %7 {strides = array<i32>} : memref<256x4xf32, #tpu.memory_space<vmem>>, vector<256x4xf32>,
    %9 = vector.extract_strided_slice %3 {offsets = [0, 36], sizes = [256, 4], strides = [1, 1]} : vector<256x40xf32> to vector<256x4xf32>
    %c0_7 = arith.constant 0 : index
    %c0_8 = arith.constant 0 : index
    %10 = vector.load %arg5[%c0_7, %c0_8] : memref<256x4xf32, #tpu.memory_space<vmem>>, vector<256x4xf32>
    tpu.vector_store %arg5[%c0_7, %c0_8], %9 {strides = array<i32>} : memref<256x4xf32, #tpu.memory_space<vmem>>, vector<256x4xf32>,
    return
  }
  func.func @transform_0(%arg0: i32) -> (i32, i32) {
    %c0_i32 = arith.constant 0 : i32
    %c0_i32_0 = arith.constant 0 : i32
    return %arg0, %c0_i32 : i32, i32
  }
  func.func @transform_1(%arg0: i32) -> (i32, i32) {
    %c0_i32 = arith.constant 0 : i32
    %c0_i32_0 = arith.constant 0 : i32
    %c0_i32_1 = arith.constant 0 : i32
    return %c0_i32, %c0_i32_0 : i32, i32
  }
  func.func @transform_2(%arg0: i32) -> (i32, i32) {
    %c0_i32 = arith.constant 0 : i32
    %c0_i32_0 = arith.constant 0 : i32
    return %arg0, %c0_i32 : i32, i32
  }
  func.func @transform_3(%arg0: i32) -> (i32, i32) {
    %c0_i32 = arith.constant 0 : i32
    %c0_i32_0 = arith.constant 0 : i32
    return %arg0, %c0_i32 : i32, i32
  }
  func.func @transform_4(%arg0: i32) -> (i32, i32) {
    %c0_i32 = arith.constant 0 : i32
    %c0_i32_0 = arith.constant 0 : i32
    return %arg0, %c0_i32 : i32, i32
  }
}

</mosaic_0001>

<bundles_post_ra>
// kernel: tpu_custom_call.1
= control target key start
LH: loop header
LB: loop body
LE: loop exit
PB: predicated region body
PF: predicated region fallthrough
CT: control target
= control target key end

     0   :  { %vm71_vm0 = vcmask 130048   ;;  %vm409_vm1 = vcmask 257024   ;;  %s880_s26 = smov 96   ;;  %s881_s12 = smov 92   ;;  %vm570_vm2 = vcmask 31744   ;;  %s1626_s1 = inlined_call_operand.vmem [shape: bf16[16,40], index: 1, kind: input, shape index: {}]   ;;  %s1627_s0 = inlined_call_operand.vmem [shape: f32[256,16], index: 0, kind: input, shape index: {}]   ;;  %s1628_s2 = inlined_call_operand.vmem [shape: bf16[256,32], index: 2, kind: output, shape index: {0}]   ;;  %s1629_s3 = inlined_call_operand.vmem [shape: f32[256,4], index: 3, kind: output, shape index: {1}]   ;;  %s1630_s4 = inlined_call_operand.vmem [shape: f32[256,4], index: 4, kind: output, shape index: {2}]  }
   0x1   :  { %v879_v0 = vld [vmem:[%s1626_s1] sm:$0xff]   ;;  %v16_v2 = vld [vmem:[%s1627_s0 + $0x8] sm:$0xff]  ;;  %v17_v6 = vld [vmem:[%s1627_s0 + $0x10] sm:$0xff] }
   0x2   :  { %v15_v1 = vld [vmem:[%s1627_s0] sm:$0xff]  ;;  %841 = vmatprep.subr.bf16.mxu0 %v879_v0  ;;  %875 = vmatprep.subr.bf16.mxu1 %v879_v0  ;;  %v32_v5 = vld [vmem:[%s1627_s0 + $0x88] sm:$0xff]  ;;  %v18_v7 = vld [vmem:[%s1627_s0 + $0x18] sm:$0xff] }
   0x3   :  { %v31_v3 = vld [vmem:[%s1627_s0 + $0x80] sm:$0xff]  ;;  %v47_v4 = vpack.c.bf16 %v16_v2, %v15_v1  ;;  %842 = vmatpush3.bf16.msra.mxu0 %v879_v0  ;;  %876 = vmatpush3.bf16.msra.mxu1 %v879_v0  ;;  %v48_v9 = vpack.c.bf16 %v18_v7, %v17_v6  ;;  %v33_v10 = vld [vmem:[%s1627_s0 + $0x90] sm:$0xff]  ;;  %v34_v11 = vld [vmem:[%s1627_s0 + $0x98] sm:$0xff] }
   0x4   :  { %v55_v8 = vpack.c.bf16 %v32_v5, %v31_v3  ;;  %v19_v12 = vld [vmem:[%s1627_s0 + $0x20] sm:$0xff]  ;;  %v56_v13 = vpack.c.bf16 %v34_v11, %v33_v10  ;;  %v20_v14 = vld [vmem:[%s1627_s0 + $0x28] sm:$0xff]  ;;  %v21_v18 = vld [vmem:[%s1627_s0 + $0x30] sm:$0xff] }
   0x5   :  { %843 = vmatprep.mubr.msk.bf16.mxu0 %vm71_vm0, %v47_v4  ;;  %v49_v15 = vpack.c.bf16 %v20_v14, %v19_v12  ;;  %v35_v16 = vld [vmem:[%s1627_s0 + $0xa0] sm:$0xff]  ;;  %v36_v17 = vld [vmem:[%s1627_s0 + $0xa8] sm:$0xff]  ;;  %v22_v19 = vld [vmem:[%s1627_s0 + $0x38] sm:$0xff] }
   0x6   :  { %859 = vmatprep.mubr.msk.bf16.mxu1 %vm71_vm0, %v55_v8  ;;  %844 = vmatmul.mubr.msk.bf16.vlgmr.msra.gmra.mrb[0].mxu0 %vm71_vm0, %v48_v9  ;;  %v57_v20 = vpack.c.bf16 %v36_v17, %v35_v16  ;;  %v37_v21 = vld [vmem:[%s1627_s0 + $0xb0] sm:$0xff]  ;;  %v38_v22 = vld [vmem:[%s1627_s0 + $0xb8] sm:$0xff]  ;;  %v23_v23 = vld [vmem:[%s1627_s0 + $0x40] sm:$0xff]  ;;  %v50_v27 = vpack.c.bf16 %v22_v19, %v21_v18 }
   0x7   :  { %860 = vmatmul.mubr.msk.bf16.vlgmr.msra.gmra.mrb[0].mxu1 %vm71_vm0, %v56_v13  ;;  %847 = vmatprep.mubr.msk.bf16.mxu0 %vm71_vm0, %v49_v15  ;;  %v24_v24 = vld [vmem:[%s1627_s0 + $0x48] sm:$0xff]  ;;  %v39_v25 = vld [vmem:[%s1627_s0 + $0xc0] sm:$0xff]  ;;  %v58_v28 = vpack.c.bf16 %v38_v22, %v37_v21  ;;  %v25_v31 = vld [vmem:[%s1627_s0 + $0x50] sm:$0xff] }
   0x8   :  { %863 = vmatprep.mubr.msk.bf16.mxu1 %vm71_vm0, %v57_v20  ;;  %v40_v26 = vld [vmem:[%s1627_s0 + $0xc8] sm:$0xff]  ;;  %v51_v29 = vpack.c.bf16 %v24_v24, %v23_v23  ;;  %v26_v32 = vld [vmem:[%s1627_s0 + $0x58] sm:$0xff]  ;;  %v41_v33 = vld [vmem:[%s1627_s0 + $0xd0] sm:$0xff] }
   0x9   :  { %v59_v30 = vpack.c.bf16 %v40_v26, %v39_v25  ;;  %v42_v34 = vld [vmem:[%s1627_s0 + $0xd8] sm:$0xff]  ;;  %v27_v35 = vld [vmem:[%s1627_s0 + $0x60] sm:$0xff]  ;;  %v28_v36 = vld [vmem:[%s1627_s0 + $0x68] sm:$0xff]  ;;  %v52_v39 = vpack.c.bf16 %v26_v32, %v25_v31 }
   0xa   :  { %v43_v37 = vld [vmem:[%s1627_s0 + $0xe0] sm:$0xff]  ;;  %v44_v38 = vld [vmem:[%s1627_s0 + $0xe8] sm:$0xff]  ;;  %v60_v40 = vpack.c.bf16 %v42_v34, %v41_v33  ;;  %v53_v41 = vpack.c.bf16 %v28_v36, %v27_v35  ;;  %v29_v43 = vld [vmem:[%s1627_s0 + $0x70] sm:$0xff] }
   0xb   :  { %v61_v42 = vpack.c.bf16 %v44_v38, %v43_v37  ;;  %v30_v44 = vld [vmem:[%s1627_s0 + $0x78] sm:$0xff]  ;;  %v45_v45 = vld [vmem:[%s1627_s0 + $0xf0] sm:$0xff] }
   0xc   :  { %v46_v46 = vld [vmem:[%s1627_s0 + $0xf8] sm:$0xff]  ;;  %v54_v47 = vpack.c.bf16 %v30_v44, %v29_v43 }
   0xd   :  { %v62_v48 = vpack.c.bf16 %v46_v46, %v45_v45 }
   0xe   :  { %848 = vmatmul.mubr.msk.bf16.gmra.mrb[4].mxu0 %vm71_vm0, %v50_v27 }
   0xf   :  { %864 = vmatmul.mubr.msk.bf16.gmra.mrb[4].mxu1 %vm71_vm0, %v58_v28  ;;  %851 = vmatprep.mubr.msk.bf16.mxu0 %vm71_vm0, %v51_v29 }
  0x10   :  { %867 = vmatprep.mubr.msk.bf16.mxu1 %vm71_vm0, %v59_v30 }
  0x16   :  { %852 = vmatmul.mubr.msk.bf16.gmra.mrb[8].mxu0 %vm71_vm0, %v52_v39 }
  0x17   :  { %868 = vmatmul.mubr.msk.bf16.gmra.mrb[8].mxu1 %vm71_vm0, %v60_v40  ;;  %855 = vmatprep.mubr.msk.bf16.mxu0 %vm71_vm0, %v53_v41 }
  0x18   :  { %871 = vmatprep.mubr.msk.bf16.mxu1 %vm71_vm0, %v61_v42 }
  0x1e   :  { %856 = vmatmul.mubr.msk.bf16.gmra.mrb[12].mxu0 %vm71_vm0, %v54_v47 }
  0x1f   :  { %872 = vmatmul.mubr.msk.bf16.gmra.mrb[12].mxu1 %vm71_vm0, %v62_v48 }
  0xd9   :  { %v845_v49 = vpop.f32.mrb[0].mxu0 }
  0xda   :  { %v861_v50 = vpop.f32.mrb[0].mxu1  ;;  %v794_v51 = vpack.c.bf16 %v845_v49, %v845_v49  ;;  %478 = vrot.lane.b32.xlu1 %v845_v49, %s880_s26  ;;  %v1026_v54 = vpop.f32.mrb[1].mxu0 }
  0xdb   :  { %v810_v52 = vpack.c.bf16 %v861_v50, %v861_v50  ;;  %510 = vrot.lane.b32.xlu0 %v861_v50, %s880_s26  ;;  %v1023_v53 = vpop.f32.mrb[1].mxu1  ;;  %v792_v56 = vpack.c.bf16 %v1026_v54, %v1026_v54  ;;  %v846_v57 = vpop.f32.mrb[2].mxu0 }
  0xdc   :  { %v808_v55 = vpack.c.bf16 %v1023_v53, %v1023_v53  ;;  %v862_v58 = vpop.f32.mrb[2].mxu1  ;;  %412 = vst.msk [vmem:[%s1628_s2 + $0x8] sm:$0xf] %vm409_vm1, %v794_v51  ;;  %v795_v59 = vpack.c.bf16 %v846_v57, %v846_v57  ;;  %v1040_v61 = vpop.f32.mrb[3].mxu0 }
  0xdd   :  { %428 = vst.msk [vmem:[%s1628_s2 + $0x48] sm:$0xf] %vm409_vm1, %v810_v52  ;;  %v811_v60 = vpack.c.bf16 %v862_v58, %v862_v58  ;;  %v1042_v62 = vpop.f32.mrb[3].mxu1  ;;  %410 = vst.msk [vmem:[%s1628_s2] sm:$0xf] %vm409_vm1, %v792_v56  ;;  %v793_v63 = vpack.c.bf16 %v1040_v61, %v1040_v61 }
  0xde   :  { %426 = vst.msk [vmem:[%s1628_s2 + $0x40] sm:$0xf] %vm409_vm1, %v808_v55  ;;  %v809_v0 = vpack.c.bf16 %v1042_v62, %v1042_v62  ;;  %413 = vst.msk [vmem:[%s1628_s2 + $0xc] sm:$0xf] %vm409_vm1, %v795_v59  ;;  %480 = vrot.lane.b32.xlu1 %v846_v57, %s880_s26 }
  0xdf   :  { %429 = vst.msk [vmem:[%s1628_s2 + $0x4c] sm:$0xf] %vm409_vm1, %v811_v60  ;;  %607 = vrot.lane.b32.xlu0 %v845_v49, %s881_s12  ;;  %411 = vst.msk [vmem:[%s1628_s2 + $0x4] sm:$0xf] %vm409_vm1, %v793_v63 }
  0xe0   :  { %427 = vst.msk [vmem:[%s1628_s2 + $0x44] sm:$0xf] %vm409_vm1, %v809_v0 }
  0xe1   :  { %v1074_v1 = vpop.f32.mrb[4].mxu0 }
  0xe2   :  { %v1076_v2 = vpop.f32.mrb[4].mxu1  ;;  %512 = vrot.lane.b32.xlu1 %v862_v58, %s880_s26  ;;  %v798_v3 = vpack.c.bf16 %v1074_v1, %v1074_v1  ;;  %v1082_v4 = vpop.f32.mrb[5].mxu0 }
  0xe3   :  { %639 = vrot.lane.b32.xlu0 %v861_v50, %s881_s12  ;;  %v814_v5 = vpack.c.bf16 %v1076_v2, %v1076_v2  ;;  %v1086_v6 = vpop.f32.mrb[5].mxu1  ;;  %v796_v7 = vpack.c.bf16 %v1082_v4, %v1082_v4  ;;  %v1090_v8 = vpop.f32.mrb[6].mxu0 }
  0xe4   :  { %v812_v9 = vpack.c.bf16 %v1086_v6, %v1086_v6  ;;  %v1094_v10 = vpop.f32.mrb[6].mxu1  ;;  %416 = vst.msk [vmem:[%s1628_s2 + $0x18] sm:$0xf] %vm409_vm1, %v798_v3  ;;  %v799_v11 = vpack.c.bf16 %v1090_v8, %v1090_v8  ;;  %v1102_v12 = vpop.f32.mrb[7].mxu0 }
  0xe5   :  { %432 = vst.msk [vmem:[%s1628_s2 + $0x58] sm:$0xf] %vm409_vm1, %v814_v5  ;;  %v815_v13 = vpack.c.bf16 %v1094_v10, %v1094_v10  ;;  %v1110_v14 = vpop.f32.mrb[7].mxu1  ;;  %414 = vst.msk [vmem:[%s1628_s2 + $0x10] sm:$0xf] %vm409_vm1, %v796_v7  ;;  %v797_v15 = vpack.c.bf16 %v1102_v12, %v1102_v12 }
  0xe6   :  { %430 = vst.msk [vmem:[%s1628_s2 + $0x50] sm:$0xf] %vm409_vm1, %v812_v9  ;;  %v813_v16 = vpack.c.bf16 %v1110_v14, %v1110_v14  ;;  %609 = vrot.lane.b32.xlu1 %v846_v57, %s881_s12  ;;  %417 = vst.msk [vmem:[%s1628_s2 + $0x1c] sm:$0xf] %vm409_vm1, %v799_v11 }
  0xe7   :  { %474 = vrot.lane.b32.xlu0 %v1026_v54, %s880_s26  ;;  %433 = vst.msk [vmem:[%s1628_s2 + $0x5c] sm:$0xf] %vm409_vm1, %v815_v13  ;;  %415 = vst.msk [vmem:[%s1628_s2 + $0x14] sm:$0xf] %vm409_vm1, %v797_v15 }
  0xe8   :  { %431 = vst.msk [vmem:[%s1628_s2 + $0x54] sm:$0xf] %vm409_vm1, %v813_v16 }
  0xe9   :  { %v1143_v17 = vpop.f32.mrb[8].mxu0 }
  0xea   :  { %v1145_v18 = vpop.f32.mrb[8].mxu1  ;;  %641 = vrot.lane.b32.xlu1 %v862_v58, %s881_s12  ;;  %v802_v19 = vpack.c.bf16 %v1143_v17, %v1143_v17  ;;  %v1152_v20 = vpop.f32.mrb[9].mxu0 }
  0xeb   :  { %506 = vrot.lane.b32.xlu0 %v1023_v53, %s880_s26  ;;  %v818_v21 = vpack.c.bf16 %v1145_v18, %v1145_v18  ;;  %v1156_v22 = vpop.f32.mrb[9].mxu1  ;;  %v800_v23 = vpack.c.bf16 %v1152_v20, %v1152_v20  ;;  %v1160_v24 = vpop.f32.mrb[10].mxu0 }
  0xec   :  { %v816_v25 = vpack.c.bf16 %v1156_v22, %v1156_v22  ;;  %v1164_v26 = vpop.f32.mrb[10].mxu1  ;;  %420 = vst.msk [vmem:[%s1628_s2 + $0x28] sm:$0xf] %vm409_vm1, %v802_v19  ;;  %v803_v27 = vpack.c.bf16 %v1160_v24, %v1160_v24  ;;  %v1172_v28 = vpop.f32.mrb[11].mxu0 }
  0xed   :  { %436 = vst.msk [vmem:[%s1628_s2 + $0x68] sm:$0xf] %vm409_vm1, %v818_v21  ;;  %v819_v29 = vpack.c.bf16 %v1164_v26, %v1164_v26  ;;  %v1180_v30 = vpop.f32.mrb[11].mxu1  ;;  %418 = vst.msk [vmem:[%s1628_s2 + $0x20] sm:$0xf] %vm409_vm1, %v800_v23  ;;  %v801_v31 = vpack.c.bf16 %v1172_v28, %v1172_v28 }
  0xee   :  { %434 = vst.msk [vmem:[%s1628_s2 + $0x60] sm:$0xf] %vm409_vm1, %v816_v25  ;;  %v817_v32 = vpack.c.bf16 %v1180_v30, %v1180_v30  ;;  %508 = vrot.lane.b32.xlu1 %v1042_v62, %s880_s26  ;;  %421 = vst.msk [vmem:[%s1628_s2 + $0x2c] sm:$0xf] %vm409_vm1, %v803_v27 }
  0xef   :  { %603 = vrot.lane.b32.xlu0 %v1026_v54, %s881_s12  ;;  %437 = vst.msk [vmem:[%s1628_s2 + $0x6c] sm:$0xf] %vm409_vm1, %v819_v29  ;;  %419 = vst.msk [vmem:[%s1628_s2 + $0x24] sm:$0xf] %vm409_vm1, %v801_v31 }
  0xf0   :  { %435 = vst.msk [vmem:[%s1628_s2 + $0x64] sm:$0xf] %vm409_vm1, %v817_v32 }
  0xf1   :  { %v1214_v33 = vpop.f32.mrb[12].mxu0 }
  0xf2   :  { %v1216_v34 = vpop.f32.mrb[12].mxu1  ;;  %605 = vrot.lane.b32.xlu1 %v1040_v61, %s881_s12  ;;  %v806_v35 = vpack.c.bf16 %v1214_v33, %v1214_v33  ;;  %v1224_v36 = vpop.f32.mrb[13].mxu0 }
  0xf3   :  { %635 = vrot.lane.b32.xlu0 %v1023_v53, %s881_s12  ;;  %v822_v37 = vpack.c.bf16 %v1216_v34, %v1216_v34  ;;  %v1228_v38 = vpop.f32.mrb[13].mxu1  ;;  %v804_v39 = vpack.c.bf16 %v1224_v36, %v1224_v36  ;;  %v858_v40 = vpop.f32.mrb[14].mxu0 }
  0xf4   :  { %v820_v41 = vpack.c.bf16 %v1228_v38, %v1228_v38  ;;  %v1234_v42 = vpop.f32.mrb[14].mxu1  ;;  %424 = vst.msk [vmem:[%s1628_s2 + $0x38] sm:$0xf] %vm409_vm1, %v806_v35  ;;  %v807_v43 = vpack.c.bf16 %v858_v40, %v858_v40  ;;  %v205_v44 = vpop.f32.mrb[15].mxu0 }
  0xf5   :  { %440 = vst.msk [vmem:[%s1628_s2 + $0x78] sm:$0xf] %vm409_vm1, %v822_v37  ;;  %v823_v45 = vpack.c.bf16 %v1234_v42, %v1234_v42  ;;  %v1246_v46 = vpop.f32.mrb[15].mxu1  ;;  %422 = vst.msk [vmem:[%s1628_s2 + $0x30] sm:$0xf] %vm409_vm1, %v804_v39  ;;  %v805_v47 = vpack.c.bf16 %v205_v44, %v205_v44 }
  0xf6   :  { %438 = vst.msk [vmem:[%s1628_s2 + $0x70] sm:$0xf] %vm409_vm1, %v820_v41  ;;  %v821_v48 = vpack.c.bf16 %v1246_v46, %v1246_v46  ;;  %637 = vrot.lane.b32.xlu1 %v1042_v62, %s881_s12  ;;  %425 = vst.msk [vmem:[%s1628_s2 + $0x3c] sm:$0xf] %vm409_vm1, %v807_v43 }
  0xf7   :  { %476 = vrot.lane.b32.xlu0 %v1040_v61, %s880_s26  ;;  %441 = vst.msk [vmem:[%s1628_s2 + $0x7c] sm:$0xf] %vm409_vm1, %v823_v45  ;;  %423 = vst.msk [vmem:[%s1628_s2 + $0x34] sm:$0xf] %vm409_vm1, %v805_v47 }
  0xf8   :  { %439 = vst.msk [vmem:[%s1628_s2 + $0x74] sm:$0xf] %vm409_vm1, %v821_v48 }
  0xfa   :  { %488 = vrot.lane.b32.xlu1 %v1090_v8, %s880_s26 }
  0xfb   :  { %486 = vrot.lane.b32.xlu0 %v1074_v1, %s880_s26 }
  0xfe   :  { %520 = vrot.lane.b32.xlu1 %v1094_v10, %s880_s26 }
  0xff   :  { %518 = vrot.lane.b32.xlu0 %v1076_v2, %s880_s26 }
 0x102   :  { %617 = vrot.lane.b32.xlu1 %v1090_v8, %s881_s12 }
 0x103   :  { %615 = vrot.lane.b32.xlu0 %v1074_v1, %s881_s12 }
 0x106   :  { %649 = vrot.lane.b32.xlu1 %v1094_v10, %s881_s12 }
 0x107   :  { %647 = vrot.lane.b32.xlu0 %v1076_v2, %s881_s12 }
 0x10a   :  { %484 = vrot.lane.b32.xlu1 %v1102_v12, %s880_s26 }
 0x10b   :  { %482 = vrot.lane.b32.xlu0 %v1082_v4, %s880_s26 }
 0x10e   :  { %516 = vrot.lane.b32.xlu1 %v1110_v14, %s880_s26 }
 0x10f   :  { %514 = vrot.lane.b32.xlu0 %v1086_v6, %s880_s26 }
 0x112   :  { %613 = vrot.lane.b32.xlu1 %v1102_v12, %s881_s12 }
 0x113   :  { %611 = vrot.lane.b32.xlu0 %v1082_v4, %s881_s12 }
 0x116   :  { %645 = vrot.lane.b32.xlu1 %v1110_v14, %s881_s12 }
 0x117   :  { %643 = vrot.lane.b32.xlu0 %v1086_v6, %s881_s12 }
 0x11a   :  { %496 = vrot.lane.b32.xlu1 %v1160_v24, %s880_s26 }
 0x11b   :  { %494 = vrot.lane.b32.xlu0 %v1143_v17, %s880_s26 }
 0x11e   :  { %528 = vrot.lane.b32.xlu1 %v1164_v26, %s880_s26 }
 0x11f   :  { %526 = vrot.lane.b32.xlu0 %v1145_v18, %s880_s26 }
 0x122   :  { %625 = vrot.lane.b32.xlu1 %v1160_v24, %s881_s12 }
 0x123   :  { %623 = vrot.lane.b32.xlu0 %v1143_v17, %s881_s12 }
 0x126   :  { %657 = vrot.lane.b32.xlu1 %v1164_v26, %s881_s12 }
 0x127   :  { %655 = vrot.lane.b32.xlu0 %v1145_v18, %s881_s12 }
 0x12a   :  { %492 = vrot.lane.b32.xlu1 %v1172_v28, %s880_s26 }
 0x12b   :  { %490 = vrot.lane.b32.xlu0 %v1152_v20, %s880_s26 }
 0x12e   :  { %524 = vrot.lane.b32.xlu1 %v1180_v30, %s880_s26 }
 0x12f   :  { %522 = vrot.lane.b32.xlu0 %v1156_v22, %s880_s26 }
 0x132   :  { %621 = vrot.lane.b32.xlu1 %v1172_v28, %s881_s12 }
 0x133   :  { %619 = vrot.lane.b32.xlu0 %v1152_v20, %s881_s12 }
 0x136   :  { %653 = vrot.lane.b32.xlu1 %v1180_v30, %s881_s12 }
 0x137   :  { %651 = vrot.lane.b32.xlu0 %v1156_v22, %s881_s12 }
 0x13a   :  { %504 = vrot.lane.b32.xlu1 %v858_v40, %s880_s26 }
 0x13b   :  { %502 = vrot.lane.b32.xlu0 %v1214_v33, %s880_s26 }
 0x13e   :  { %536 = vrot.lane.b32.xlu1 %v1234_v42, %s880_s26 }
 0x13f   :  { %534 = vrot.lane.b32.xlu0 %v1216_v34, %s880_s26 }
 0x142   :  { %633 = vrot.lane.b32.xlu1 %v858_v40, %s881_s12 }
 0x143   :  { %631 = vrot.lane.b32.xlu0 %v1214_v33, %s881_s12 }
 0x146   :  { %500 = vrot.lane.b32.xlu1 %v205_v44, %s880_s26 }
 0x147   :  { %498 = vrot.lane.b32.xlu0 %v1224_v36, %s880_s26 }
 0x14a   :  { %532 = vrot.lane.b32.xlu1 %v1246_v46, %s880_s26 }
 0x14b   :  { %530 = vrot.lane.b32.xlu0 %v1228_v38, %s880_s26 }
 0x14c   :  { %v479_v50 = vpop.permute.xlu1 %478 }
 0x14d   :  { %v511_v49 = vpop.permute.xlu0 %510  ;;  %573 = vst.msk [vmem:[%s1629_s3 + $0x10] sm:$0xff] %vm570_vm2, %v479_v50 }
 0x14e   :  { %589 = vst.msk [vmem:[%s1629_s3 + $0x90] sm:$0xff] %vm570_vm2, %v511_v49  ;;  %629 = vrot.lane.b32.xlu1 %v205_v44, %s881_s12 }
 0x14f   :  { %627 = vrot.lane.b32.xlu0 %v1224_v36, %s881_s12 }
 0x150   :  { %v481_v52 = vpop.permute.xlu1 %480 }
 0x151   :  { %v608_v51 = vpop.permute.xlu0 %607  ;;  %574 = vst.msk [vmem:[%s1629_s3 + $0x18] sm:$0xff] %vm570_vm2, %v481_v52 }
 0x152   :  { %701 = vst.msk [vmem:[%s1630_s4 + $0x10] sm:$0xff] %vm570_vm2, %v608_v51  ;;  %661 = vrot.lane.b32.xlu1 %v1246_v46, %s881_s12 }
 0x153   :  { %659 = vrot.lane.b32.xlu0 %v1228_v38, %s881_s12 }
 0x154   :  { %v513_v54 = vpop.permute.xlu1 %512 }
 0x155   :  { %v640_v53 = vpop.permute.xlu0 %639  ;;  %590 = vst.msk [vmem:[%s1629_s3 + $0x98] sm:$0xff] %vm570_vm2, %v513_v54 }
 0x156   :  { %717 = vst.msk [vmem:[%s1630_s4 + $0x90] sm:$0xff] %vm570_vm2, %v640_v53  ;;  %665 = vrot.lane.b32.xlu1 %v1234_v42, %s881_s12 }
 0x157   :  { %663 = vrot.lane.b32.xlu0 %v1216_v34, %s881_s12 }
 0x158   :  { %v610_v56 = vpop.permute.xlu1 %609 }
 0x159   :  { %v475_v55 = vpop.permute.xlu0 %474  ;;  %702 = vst.msk [vmem:[%s1630_s4 + $0x18] sm:$0xff] %vm570_vm2, %v610_v56 }
 0x15a   :  { %571 = vst.msk [vmem:[%s1629_s3] sm:$0xff] %vm570_vm2, %v475_v55 }
 0x15c   :  { %v642_v58 = vpop.permute.xlu1 %641 }
 0x15d   :  { %v507_v57 = vpop.permute.xlu0 %506  ;;  %718 = vst.msk [vmem:[%s1630_s4 + $0x98] sm:$0xff] %vm570_vm2, %v642_v58 }
 0x15e   :  { %587 = vst.msk [vmem:[%s1629_s3 + $0x80] sm:$0xff] %vm570_vm2, %v507_v57 }
 0x160   :  { %v509_v60 = vpop.permute.xlu1 %508 }
 0x161   :  { %v604_v59 = vpop.permute.xlu0 %603  ;;  %588 = vst.msk [vmem:[%s1629_s3 + $0x88] sm:$0xff] %vm570_vm2, %v509_v60 }
 0x162   :  { %699 = vst.msk [vmem:[%s1630_s4] sm:$0xff] %vm570_vm2, %v604_v59 }
 0x164   :  { %v606_v62 = vpop.permute.xlu1 %605 }
 0x165   :  { %v636_v61 = vpop.permute.xlu0 %635  ;;  %700 = vst.msk [vmem:[%s1630_s4 + $0x8] sm:$0xff] %vm570_vm2, %v606_v62 }
 0x166   :  { %715 = vst.msk [vmem:[%s1630_s4 + $0x80] sm:$0xff] %vm570_vm2, %v636_v61 }
 0x168   :  { %v638_v63 = vpop.permute.xlu1 %637 }
 0x169   :  { %v477_v0 = vpop.permute.xlu0 %476  ;;  %716 = vst.msk [vmem:[%s1630_s4 + $0x88] sm:$0xff] %vm570_vm2, %v638_v63 }
 0x16a   :  { %572 = vst.msk [vmem:[%s1629_s3 + $0x8] sm:$0xff] %vm570_vm2, %v477_v0 }
 0x16c   :  { %v489_v2 = vpop.permute.xlu1 %488 }
 0x16d   :  { %v487_v1 = vpop.permute.xlu0 %486  ;;  %578 = vst.msk [vmem:[%s1629_s3 + $0x38] sm:$0xff] %vm570_vm2, %v489_v2 }
 0x16e   :  { %577 = vst.msk [vmem:[%s1629_s3 + $0x30] sm:$0xff] %vm570_vm2, %v487_v1 }
 0x170   :  { %v521_v4 = vpop.permute.xlu1 %520 }
 0x171   :  { %v519_v3 = vpop.permute.xlu0 %518  ;;  %594 = vst.msk [vmem:[%s1629_s3 + $0xb8] sm:$0xff] %vm570_vm2, %v521_v4 }
 0x172   :  { %593 = vst.msk [vmem:[%s1629_s3 + $0xb0] sm:$0xff] %vm570_vm2, %v519_v3 }
 0x174   :  { %v618_v6 = vpop.permute.xlu1 %617 }
 0x175   :  { %v616_v5 = vpop.permute.xlu0 %615  ;;  %706 = vst.msk [vmem:[%s1630_s4 + $0x38] sm:$0xff] %vm570_vm2, %v618_v6 }
 0x176   :  { %705 = vst.msk [vmem:[%s1630_s4 + $0x30] sm:$0xff] %vm570_vm2, %v616_v5 }
 0x178   :  { %v650_v8 = vpop.permute.xlu1 %649 }
 0x179   :  { %v648_v7 = vpop.permute.xlu0 %647  ;;  %722 = vst.msk [vmem:[%s1630_s4 + $0xb8] sm:$0xff] %vm570_vm2, %v650_v8 }
 0x17a   :  { %721 = vst.msk [vmem:[%s1630_s4 + $0xb0] sm:$0xff] %vm570_vm2, %v648_v7 }
 0x17c   :  { %v485_v10 = vpop.permute.xlu1 %484 }
 0x17d   :  { %v483_v9 = vpop.permute.xlu0 %482  ;;  %576 = vst.msk [vmem:[%s1629_s3 + $0x28] sm:$0xff] %vm570_vm2, %v485_v10 }
 0x17e   :  { %575 = vst.msk [vmem:[%s1629_s3 + $0x20] sm:$0xff] %vm570_vm2, %v483_v9 }
 0x180   :  { %v517_v12 = vpop.permute.xlu1 %516 }
 0x181   :  { %v515_v11 = vpop.permute.xlu0 %514  ;;  %592 = vst.msk [vmem:[%s1629_s3 + $0xa8] sm:$0xff] %vm570_vm2, %v517_v12 }
 0x182   :  { %591 = vst.msk [vmem:[%s1629_s3 + $0xa0] sm:$0xff] %vm570_vm2, %v515_v11 }
 0x184   :  { %v614_v14 = vpop.permute.xlu1 %613 }
 0x185   :  { %v612_v13 = vpop.permute.xlu0 %611  ;;  %704 = vst.msk [vmem:[%s1630_s4 + $0x28] sm:$0xff] %vm570_vm2, %v614_v14 }
 0x186   :  { %703 = vst.msk [vmem:[%s1630_s4 + $0x20] sm:$0xff] %vm570_vm2, %v612_v13 }
 0x188   :  { %v646_v16 = vpop.permute.xlu1 %645 }
 0x189   :  { %v644_v15 = vpop.permute.xlu0 %643  ;;  %720 = vst.msk [vmem:[%s1630_s4 + $0xa8] sm:$0xff] %vm570_vm2, %v646_v16 }
 0x18a   :  { %719 = vst.msk [vmem:[%s1630_s4 + $0xa0] sm:$0xff] %vm570_vm2, %v644_v15 }
 0x18c   :  { %v497_v18 = vpop.permute.xlu1 %496 }
 0x18d   :  { %v495_v17 = vpop.permute.xlu0 %494  ;;  %582 = vst.msk [vmem:[%s1629_s3 + $0x58] sm:$0xff] %vm570_vm2, %v497_v18 }
 0x18e   :  { %581 = vst.msk [vmem:[%s1629_s3 + $0x50] sm:$0xff] %vm570_vm2, %v495_v17 }
 0x190   :  { %v529_v20 = vpop.permute.xlu1 %528 }
 0x191   :  { %v527_v19 = vpop.permute.xlu0 %526  ;;  %598 = vst.msk [vmem:[%s1629_s3 + $0xd8] sm:$0xff] %vm570_vm2, %v529_v20 }
 0x192   :  { %597 = vst.msk [vmem:[%s1629_s3 + $0xd0] sm:$0xff] %vm570_vm2, %v527_v19 }
 0x194   :  { %v626_v22 = vpop.permute.xlu1 %625 }
 0x195   :  { %v624_v21 = vpop.permute.xlu0 %623  ;;  %710 = vst.msk [vmem:[%s1630_s4 + $0x58] sm:$0xff] %vm570_vm2, %v626_v22 }
 0x196   :  { %709 = vst.msk [vmem:[%s1630_s4 + $0x50] sm:$0xff] %vm570_vm2, %v624_v21 }
 0x198   :  { %v658_v24 = vpop.permute.xlu1 %657 }
 0x199   :  { %v656_v23 = vpop.permute.xlu0 %655  ;;  %726 = vst.msk [vmem:[%s1630_s4 + $0xd8] sm:$0xff] %vm570_vm2, %v658_v24 }
 0x19a   :  { %725 = vst.msk [vmem:[%s1630_s4 + $0xd0] sm:$0xff] %vm570_vm2, %v656_v23 }
 0x19c   :  { %v493_v26 = vpop.permute.xlu1 %492 }
 0x19d   :  { %v491_v25 = vpop.permute.xlu0 %490  ;;  %580 = vst.msk [vmem:[%s1629_s3 + $0x48] sm:$0xff] %vm570_vm2, %v493_v26 }
 0x19e   :  { %579 = vst.msk [vmem:[%s1629_s3 + $0x40] sm:$0xff] %vm570_vm2, %v491_v25 }
 0x1a0   :  { %v525_v28 = vpop.permute.xlu1 %524 }
 0x1a1   :  { %v523_v27 = vpop.permute.xlu0 %522  ;;  %596 = vst.msk [vmem:[%s1629_s3 + $0xc8] sm:$0xff] %vm570_vm2, %v525_v28 }
 0x1a2   :  { %595 = vst.msk [vmem:[%s1629_s3 + $0xc0] sm:$0xff] %vm570_vm2, %v523_v27 }
 0x1a4   :  { %v622_v30 = vpop.permute.xlu1 %621 }
 0x1a5   :  { %v620_v29 = vpop.permute.xlu0 %619  ;;  %708 = vst.msk [vmem:[%s1630_s4 + $0x48] sm:$0xff] %vm570_vm2, %v622_v30 }
 0x1a6   :  { %707 = vst.msk [vmem:[%s1630_s4 + $0x40] sm:$0xff] %vm570_vm2, %v620_v29 }
 0x1a8   :  { %v654_v32 = vpop.permute.xlu1 %653 }
 0x1a9   :  { %v652_v31 = vpop.permute.xlu0 %651  ;;  %724 = vst.msk [vmem:[%s1630_s4 + $0xc8] sm:$0xff] %vm570_vm2, %v654_v32 }
 0x1aa   :  { %723 = vst.msk [vmem:[%s1630_s4 + $0xc0] sm:$0xff] %vm570_vm2, %v652_v31 }
 0x1ac   :  { %v505_v34 = vpop.permute.xlu1 %504 }
 0x1ad   :  { %v503_v33 = vpop.permute.xlu0 %502  ;;  %586 = vst.msk [vmem:[%s1629_s3 + $0x78] sm:$0xff] %vm570_vm2, %v505_v34 }
 0x1ae   :  { %585 = vst.msk [vmem:[%s1629_s3 + $0x70] sm:$0xff] %vm570_vm2, %v503_v33 }
 0x1b0   :  { %v537_v36 = vpop.permute.xlu1 %536 }
 0x1b1   :  { %v535_v35 = vpop.permute.xlu0 %534  ;;  %602 = vst.msk [vmem:[%s1629_s3 + $0xf8] sm:$0xff] %vm570_vm2, %v537_v36 }
 0x1b2   :  { %601 = vst.msk [vmem:[%s1629_s3 + $0xf0] sm:$0xff] %vm570_vm2, %v535_v35 }
 0x1b4   :  { %v634_v38 = vpop.permute.xlu1 %633 }
 0x1b5   :  { %v632_v37 = vpop.permute.xlu0 %631  ;;  %714 = vst.msk [vmem:[%s1630_s4 + $0x78] sm:$0xff] %vm570_vm2, %v634_v38 }
 0x1b6   :  { %713 = vst.msk [vmem:[%s1630_s4 + $0x70] sm:$0xff] %vm570_vm2, %v632_v37 }
 0x1b8   :  { %v501_v40 = vpop.permute.xlu1 %500 }
 0x1b9   :  { %v499_v39 = vpop.permute.xlu0 %498  ;;  %584 = vst.msk [vmem:[%s1629_s3 + $0x68] sm:$0xff] %vm570_vm2, %v501_v40 }
 0x1ba   :  { %583 = vst.msk [vmem:[%s1629_s3 + $0x60] sm:$0xff] %vm570_vm2, %v499_v39 }
 0x1bc   :  { %v533_v42 = vpop.permute.xlu1 %532 }
 0x1bd   :  { %v531_v41 = vpop.permute.xlu0 %530  ;;  %600 = vst.msk [vmem:[%s1629_s3 + $0xe8] sm:$0xff] %vm570_vm2, %v533_v42 }
 0x1be   :  { %599 = vst.msk [vmem:[%s1629_s3 + $0xe0] sm:$0xff] %vm570_vm2, %v531_v41 }
 0x1c0   :  { %v630_v44 = vpop.permute.xlu1 %629 }
 0x1c1   :  { %v628_v43 = vpop.permute.xlu0 %627  ;;  %712 = vst.msk [vmem:[%s1630_s4 + $0x68] sm:$0xff] %vm570_vm2, %v630_v44 }
 0x1c2   :  { %711 = vst.msk [vmem:[%s1630_s4 + $0x60] sm:$0xff] %vm570_vm2, %v628_v43 }
 0x1c4   :  { %v662_v46 = vpop.permute.xlu1 %661 }
 0x1c5   :  { %v660_v45 = vpop.permute.xlu0 %659  ;;  %728 = vst.msk [vmem:[%s1630_s4 + $0xe8] sm:$0xff] %vm570_vm2, %v662_v46 }
 0x1c6   :  { %727 = vst.msk [vmem:[%s1630_s4 + $0xe0] sm:$0xff] %vm570_vm2, %v660_v45 }
 0x1c8   :  { %v666_v48 = vpop.permute.xlu1 %665 }
 0x1c9   :  { %v664_v47 = vpop.permute.xlu0 %663  ;;  %730 = vst.msk [vmem:[%s1630_s4 + $0xf8] sm:$0xff] %vm570_vm2, %v666_v48 }
 0x1ca   :  { %729 = vst.msk [vmem:[%s1630_s4 + $0xf0] sm:$0xff] %vm570_vm2, %v664_v47 }

</bundles_post_ra>
